<compile_context>
chip_gen: v7x
topology: tpu7x:2x2x1
jax: 0.10.0
libtpu: 0.0.40
codegen_flags: <defaults>
</compile_context>

<pallas_src>
import jax
import jax.numpy as jnp
from jax import lax
from jax.experimental import pallas as pl
from jax.experimental.pallas import tpu as pltpu


def gcn_kernel(a_ref, x_ref, w_ref, b_ref, o_ref):
    # Per grid step (Bg graphs of the batch):
    #   a_ref: (Bg, N, N) bf16     x_ref: (Bg, N, F_in) f32
    #   w_ref: (F_in, F_pad) f32   b_ref: (1, F_pad) f32
    #   o_ref: (Bg, N, F_pad) f32          (F_pad = F_out rounded up to 128)
    a = a_ref[...].astype(jnp.float32)          # bf16 DMA, exact f32 upcast
    x = x_ref[...]
    f_in = x.shape[-1]
    f_pad = w_ref.shape[-1]

    # d = (rowsum(A) + 1) ** -0.5  -- self-loop folded into "+1", no dense eye.
    deg = jnp.sum(a, axis=-1, keepdims=True) + jnp.float32(1.0)   # (Bg, N, 1)
    d = lax.rsqrt(deg)                                            # EUP

    # Contract last axis of lhs with first axis of rhs -> (Bg, N, F) directly,
    # no (Bg*N, F) reshape round-trip.
    dn = (((2,), (0,)), ((), ()))

    if f_in <= f_pad:
        # out = (L @ X) @ W + (L @ 1) * b    (L never formed: L@v = d*(A@(d*v)+d*v))
        dx = d * x                                                # (Bg, N, F_in)
        lx = d * (jnp.einsum('bij,bjf->bif', a, dx,
                             preferred_element_type=jnp.float32) + dx)
        l1 = d * (jnp.einsum('bij,bjf->bif', a, d,
                             preferred_element_type=jnp.float32) + d)   # (Bg, N, 1)
        out = lax.dot_general(lx, w_ref[...], dn,
                              preferred_element_type=jnp.float32) + l1 * b_ref[...]
    else:
        # out = L @ (X @ W_t + b)  -- cheaper when F_out_pad <= F_in.
        h = lax.dot_general(x, w_ref[...], dn,
                            preferred_element_type=jnp.float32) + b_ref[...]
        dh = d * h
        out = d * (jnp.einsum('bij,bjf->bif', a, dh,
                              preferred_element_type=jnp.float32) + dh)

    o_ref[...] = out.astype(o_ref.dtype)


def _round_up(x, m):
    return ((x + m - 1) // m) * m


def _vmem_params():
    """(budget_bytes, prefer_even_grid) chosen per TPU generation."""
    phys = 64 * 1024 * 1024                       # conservative default (v7x)
    try:
        phys = int(pltpu.get_tpu_info().vmem_capacity_bytes)
    except Exception:
        pass
    if phys >= 128 * 1024 * 1024:
        # v5e / v6e: 128 MiB VMEM, single TensorCore -> one big tile is best.
        return 100 * 1024 * 1024, False
    # v7x: 64 MiB VMEM, 2 TensorCores -> leave headroom, want even grid length.
    return 48 * 1024 * 1024, True


def _plan(B, N, F_in, F_pad, budget_bytes, prefer_even_grid):
    """Pick graphs-per-step (block_b) and A-stream buffer depth against VMEM."""
    # Double-buffered pipeline I/O per graph (A in bf16, X/out in f32).
    db = 2 * (2 * N * N + 4 * N * F_in + 4 * N * F_pad)
    # In-kernel f32 temporaries per graph (A upcast, dx/lx or h/dh, etc.).
    tmp = 4 * (N * N + 2 * N * (F_in + 1) + 2 * N * F_pad)
    per_graph = db + tmp
    # Grid-invariant weights/bias (double-buffered) + 1 MiB slack.
    fixed = 2 * 4 * (F_in * F_pad + F_pad) + (1 << 20)

    max_bg = max(1, (budget_bytes - fixed) // per_graph)
    # TODO(synk): if even bg=1 exceeds the budget (very large N) the kernel
    # would need an inner N-tiling; not implemented here.
    divisors = [bg for bg in range(1, B + 1) if B % bg == 0]
    fitting = [bg for bg in divisors if bg <= max_bg] or [1]

    bg = max(fitting)
    if prefer_even_grid:
        even = [c for c in fitting if (B // c) % 2 == 0]
        if even:
            bg = max(even)

    # Small tiles + many steps can leave DMA latency exposed; triple-buffer A
    # only if the budget still has headroom for a third bf16 A buffer.
    used = fixed + per_graph * bg
    a_bufs = 3 if (B // bg >= 4 and used + 2 * N * N * bg <= budget_bytes) else 2
    return bg, a_bufs


def gcn_forward(X, A, W_t, b, *, block_b=None):
    """X: (B, N, F_in), A: (B, N, N), W_t: (F_in, F_out), b: (F_out,) or (1, F_out)."""
    B, N, F_in = X.shape
    F_out = W_t.shape[1]
    F_pad = _round_up(max(F_out, 1), 128)

    # Wrapper-side layout plumbing (all grid-invariant):
    #   zero-pad W/b columns to F_pad (padded output columns are exactly 0),
    #   cast A to bf16 (0/1 values are exact).
    W_pad = jnp.pad(W_t.astype(jnp.float32), ((0, 0), (0, F_pad - F_out)))
    b_pad = jnp.pad(jnp.reshape(b, (1, F_out)).astype(jnp.float32),
                    ((0, 0), (0, F_pad - F_out)))
    A_bf16 = A.astype(jnp.bfloat16)

    budget, prefer_even = _vmem_params()
    if block_b is not None:
        bg, a_bufs = block_b, 2
    else:
        bg, a_bufs = _plan(B, N, F_in, F_pad, budget, prefer_even)
    assert B % bg == 0, (B, bg)

    if a_bufs == 3:
        a_spec = pl.BlockSpec((bg, N, N), lambda i: (i, 0, 0),
                              pipeline_mode=pl.Buffered(3))
    else:
        a_spec = pl.BlockSpec((bg, N, N), lambda i: (i, 0, 0))

    cost = pl.CostEstimate(
        flops=int(2 * B * (N * N * (min(F_in, F_pad) + 1) + N * F_in * F_pad)),
        transcendentals=int(B * N),
        bytes_accessed=int(2 * B * N * N
                           + 4 * (B * N * F_in + F_in * F_pad + F_pad
                                  + B * N * F_pad)),
    )

    out_padded = pl.pallas_call(
        gcn_kernel,
        out_shape=jax.ShapeDtypeStruct((B, N, F_pad), jnp.float32),
        grid_spec=pltpu.PrefetchScalarGridSpec(
            num_scalar_prefetch=0,
            grid=(B // bg,),
            in_specs=[
                a_spec,
                pl.BlockSpec((bg, N, F_in), lambda i: (i, 0, 0)),
                pl.BlockSpec((F_in, F_pad), lambda i: (0, 0)),
                pl.BlockSpec((1, F_pad), lambda i: (0, 0)),
            ],
            out_specs=pl.BlockSpec((bg, N, F_pad), lambda i: (i, 0, 0)),
        ),
        compiler_params=pltpu.CompilerParams(
            dimension_semantics=("parallel",),
            vmem_limit_bytes=int(budget),   # same number that sized block_b
        ),
        cost_estimate=cost,
    )(A_bf16, X.astype(jnp.float32), W_pad, b_pad)

    # External shape unchanged: drop the zero lane-padding.
    return out_padded[:, :, :F_out]


def gcn_reference(X, A, W_t, b):
    """Pure-JAX reference of the PyTorch forward (for correctness check)."""
    N = A.shape[-1]
    a_hat = A + jnp.eye(N, dtype=A.dtype)[None]
    d = jnp.power(a_hat.sum(-1), -0.5)
    D = jax.vmap(jnp.diag)(d)
    L = D @ a_hat @ D
    h = X @ W_t + jnp.reshape(b, (1, -1))
    return L @ h


def _make_inputs(key, B, N, F_in, F_out):
    k_a, k_x, k_w, k_b = jax.random.split(key, 4)
    A = jax.random.bernoulli(k_a, p=0.5, shape=(B, N, N)).astype(jnp.float32)
    X = jax.random.uniform(k_x, (B, N, F_in), dtype=jnp.float32)
    bound = 1.0 / (F_in ** 0.5)               # nn.Linear default init range
    W = jax.random.uniform(k_w, (F_out, F_in), minval=-bound, maxval=bound,
                           dtype=jnp.float32)
    b = jax.random.uniform(k_b, (F_out,), minval=-bound, maxval=bound,
                           dtype=jnp.float32)
    return A, X, W.T, b.reshape(1, F_out)


if __name__ == "__main__":
    key = jax.random.PRNGKey(0)
    k1, k2 = jax.random.split(key)

    # Expansion layer (F_in < F_out): exercises the (L@X)@W + (L@1)*b branch.
    B, N, F_in, F_out = 2, 16, 8, 32
    A, X, W_t, b2d = _make_inputs(k1, B, N, F_in, F_out)
    out = jax.block_until_ready(gcn_forward(X, A, W_t, b2d))
    ref = gcn_reference(X, A, W_t, b2d)
    assert out.shape == (B, N, F_out)
    assert jnp.allclose(out, ref, atol=1e-4, rtol=1e-4)

    # Wide-input layer (F_in > padded F_out): exercises the L@(XW+b) branch.
    B2, N2, F_in2, F_out2 = 2, 16, 160, 8
    A2, X2, W_t2, b2 = _make_inputs(k2, B2, N2, F_in2, F_out2)
    out2 = jax.block_until_ready(gcn_forward(X2, A2, W_t2, b2))
    ref2 = gcn_reference(X2, A2, W_t2, b2)
    assert out2.shape == (B2, N2, F_out2)
    assert jnp.allclose(out2, ref2, atol=1e-4, rtol=1e-4)

    print("KERNEL_OK")
</pallas_src>

<mosaic_0001>
module attributes {stable_mosaic.version = 11 : i64} {
  func.func @gcn_kernel(%arg0: i32, %arg1: memref<1x16x16xbf16, #tpu.memory_space<vmem>>, %arg2: memref<1x16x8xf32, #tpu.memory_space<vmem>>, %arg3: memref<8x128xf32, #tpu.memory_space<vmem>>, %arg4: memref<1x128xf32, #tpu.memory_space<vmem>>, %arg5: memref<1x16x128xf32, #tpu.memory_space<vmem>>) attributes {dimension_semantics = [#tpu.dimension_semantics<parallel>], iteration_bounds = array<i64: 2>, scalar_prefetch = 0 : i64, scratch_operands = 0 : i64, tpu.core_type = #tpu.core_type<tc>, window_params = [{transform_indices = @transform_0, window_bounds = array<i64: 1, 16, 16>}, {transform_indices = @transform_1, window_bounds = array<i64: 1, 16, 8>}, {pipeline_mode = #tpu.pipeline_mode<synchronous>, transform_indices = @transform_2, window_bounds = array<i64: 8, 128>}, {pipeline_mode = #tpu.pipeline_mode<synchronous>, transform_indices = @transform_3, window_bounds = array<i64: 1, 128>}, {transform_indices = @transform_4, window_bounds = array<i64: 1, 16, 128>}]} {
    %c0 = arith.constant 0 : index
    %c0_0 = arith.constant 0 : index
    %c0_1 = arith.constant 0 : index
    %0 = vector.load %arg1[%c0, %c0_0, %c0_1] : memref<1x16x16xbf16, #tpu.memory_space<vmem>>, vector<1x16x16xbf16>
    %1 = arith.extf %0 : vector<1x16x16xbf16> to vector<1x16x16xf32>
    %c0_2 = arith.constant 0 : index
    %c0_3 = arith.constant 0 : index
    %c0_4 = arith.constant 0 : index
    %2 = vector.load %arg2[%c0_2, %c0_3, %c0_4] : memref<1x16x8xf32, #tpu.memory_space<vmem>>, vector<1x16x8xf32>
    %cst = arith.constant dense<0.000000e+00> : vector<1x16xf32>
    %3 = vector.multi_reduction <add>, %1, %cst [2] : vector<1x16x16xf32> to vector<1x16xf32>
    %4 = vector.shape_cast %3 : vector<1x16xf32> to vector<1x16x1xf32>
    %cst_5 = arith.constant 1.000000e+00 : f32
    %5 = vector.broadcast %cst_5 : f32 to vector<1x16x1xf32>
    %6 = arith.addf %4, %5 : vector<1x16x1xf32>
    %7 = math.rsqrt %6 : vector<1x16x1xf32>
    %8 = vector.broadcast %7 : vector<1x16x1xf32> to vector<1x16x8xf32>
    %9 = arith.mulf %8, %2 : vector<1x16x8xf32>
    "tpu.trace_start"() <{level = 10 : i32, message = "bij,bjf->bif"}> : () -> ()
    %cst_6 = arith.constant dense<0.000000e+00> : vector<1x16x8xf32>
    %10 = tpu.matmul %1, %9, %cst_6 {dimension_numbers = #tpu.dot_dimension_numbers<[2], [1], [1], [2], [0, 0, 0, 1, 1, 2], [0], [0]>} : vector<1x16x16xf32>, vector<1x16x8xf32>, vector<1x16x8xf32> -> vector<1x16x8xf32>
    "tpu.trace_stop"() : () -> ()
    %11 = arith.addf %10, %9 : vector<1x16x8xf32>
    %12 = vector.broadcast %7 : vector<1x16x1xf32> to vector<1x16x8xf32>
    %13 = arith.mulf %12, %11 : vector<1x16x8xf32>
    "tpu.trace_start"() <{level = 10 : i32, message = "bij,bjf->bif"}> : () -> ()
    %cst_7 = arith.constant dense<0.000000e+00> : vector<1x16x1xf32>
    %14 = tpu.matmul %1, %7, %cst_7 {dimension_numbers = #tpu.dot_dimension_numbers<[2], [1], [1], [2], [0, 0, 0, 1, 1, 2], [0], [0]>} : vector<1x16x16xf32>, vector<1x16x1xf32>, vector<1x16x1xf32> -> vector<1x16x1xf32>
    "tpu.trace_stop"() : () -> ()
    %15 = arith.addf %14, %7 : vector<1x16x1xf32>
    %16 = arith.mulf %7, %15 : vector<1x16x1xf32>
    %c0_8 = arith.constant 0 : index
    %c0_9 = arith.constant 0 : index
    %17 = vector.load %arg3[%c0_8, %c0_9] : memref<8x128xf32, #tpu.memory_space<vmem>>, vector<8x128xf32>
    %cst_10 = arith.constant dense<0.000000e+00> : vector<1x16x128xf32>
    %18 = tpu.matmul %13, %17, %cst_10 {dimension_numbers = #tpu.dot_dimension_numbers<[2], [0], [0, 1], [1], [0, 0, 0, 1, 1, 1], [], []>} : vector<1x16x8xf32>, vector<8x128xf32>, vector<1x16x128xf32> -> vector<1x16x128xf32>
    %c0_11 = arith.constant 0 : index
    %c0_12 = arith.constant 0 : index
    %19 = vector.load %arg4[%c0_11, %c0_12] : memref<1x128xf32, #tpu.memory_space<vmem>>, vector<1x128xf32>
    %20 = vector.shape_cast %19 : vector<1x128xf32> to vector<1x1x128xf32>
    %21 = vector.broadcast %16 : vector<1x16x1xf32> to vector<1x16x128xf32>
    %22 = vector.broadcast %20 : vector<1x1x128xf32> to vector<1x16x128xf32>
    %23 = arith.mulf %21, %22 : vector<1x16x128xf32>
    %24 = arith.addf %18, %23 : vector<1x16x128xf32>
    %c0_13 = arith.constant 0 : index
    %c0_14 = arith.constant 0 : index
    %c0_15 = arith.constant 0 : index
    %25 = vector.load %arg5[%c0_13, %c0_14, %c0_15] : memref<1x16x128xf32, #tpu.memory_space<vmem>>, vector<1x16x128xf32>
    tpu.vector_store %arg5[%c0_13, %c0_14, %c0_15], %24 {strides = array<i32>} : memref<1x16x128xf32, #tpu.memory_space<vmem>>, vector<1x16x128xf32>,
    return
  }
  func.func @transform_0(%arg0: i32) -> (i32, i32, i32) {
    %c0_i32 = arith.constant 0 : i32
    %c0_i32_0 = arith.constant 0 : i32
    %c0_i32_1 = arith.constant 0 : i32
    return %arg0, %c0_i32, %c0_i32_0 : i32, i32, i32
  }
  func.func @transform_1(%arg0: i32) -> (i32, i32, i32) {
    %c0_i32 = arith.constant 0 : i32
    %c0_i32_0 = arith.constant 0 : i32
    %c0_i32_1 = arith.constant 0 : i32
    return %arg0, %c0_i32, %c0_i32_0 : i32, i32, i32
  }
  func.func @transform_2(%arg0: i32) -> (i32, i32) {
    %c0_i32 = arith.constant 0 : i32
    %c0_i32_0 = arith.constant 0 : i32
    %c0_i32_1 = arith.constant 0 : i32
    return %c0_i32, %c0_i32_0 : i32, i32
  }
  func.func @transform_3(%arg0: i32) -> (i32, i32) {
    %c0_i32 = arith.constant 0 : i32
    %c0_i32_0 = arith.constant 0 : i32
    %c0_i32_1 = arith.constant 0 : i32
    return %c0_i32, %c0_i32_0 : i32, i32
  }
  func.func @transform_4(%arg0: i32) -> (i32, i32, i32) {
    %c0_i32 = arith.constant 0 : i32
    %c0_i32_0 = arith.constant 0 : i32
    %c0_i32_1 = arith.constant 0 : i32
    return %arg0, %c0_i32, %c0_i32_0 : i32, i32, i32
  }
}

</mosaic_0001>

<bundles_post_ra>
// kernel: tpu_custom_call.1
= control target key start
LH: loop header
LB: loop body
LE: loop exit
PB: predicated region body
PF: predicated region fallthrough
CT: control target
= control target key end

     0   :  { %9 = vsyncpa [#allocation3], 0  ;;  %s912_s0 = inlined_call_operand.vmem [shape: bf16[2,16,16], index: 0, kind: input, shape index: {}]   ;;  %s913_s1 = inlined_call_operand.vmem [shape: f32[2,16,8], index: 1, kind: input, shape index: {}]   ;;  %s914_s2 = inlined_call_operand.vmem [shape: f32[8,128], index: 2, kind: input, shape index: {}]   ;;  %s915_s3 = inlined_call_operand.vmem [shape: f32[1,128], index: 3, kind: input, shape index: {}]   ;;  %s916_s4 = inlined_call_operand.hbm [shape: f32[2,16,128], index: 4, kind: output, shape index: {}]  }
   0x1   :  { %11 = vsyncpa [#allocation3 + $0x1], 0  ;;  %s794_s15 = smov 0   ;;  %s796_s16 = smov 0  }
   0x2   :  { %s798_s17 = smov 0   ;;  %s800_s18 = smov 0  }
   0x3 LB: > { %s815_s19 = sadd.s32 4294967295, %s763_s18   ;;  %s587_s20 = sadd.s32 4294967294, %s763_s18   ;;  %s763_s18 = sphi %s800_s18, %s922_s18   ;;  %s759_s17 = sphi %s798_s17, %s921_s17   ;;  %s755_s16 = sphi %s796_s16, %s920_s16   ;;  %s751_s15 = sphi %s794_s15, %s919_s15  }
   0x4   : > { %s819_s21 = sadd.s32 1, %s763_s18   ;;  %s118_s22 = sadd.s32 1, %s759_s17 }
   0x5   : > { %s115_s23 = ssub.s32 %s763_s18, %s819_s21  ;;  %p128_p0 = scmp.ne.s32.totalorder %s759_s17, %s755_s16 }
   0x6   : > { %p116_p1 = scmp.eq.s32.totalorder %s115_s23, 0  ;;  %p129_p2 = scmp.eq.s32.totalorder %s815_s19, 1 }
   0x7   : > { %p134_p3 = scmp.ne.s32.totalorder %s755_s16, %s751_s15  ;;  %p135_p4 = scmp.eq.s32.totalorder %s587_s20, 1 }
   0x8   : > { %s830_s24 = scalar_select %p116_p1, %s759_s17, %s118_s22  }
   0x9   : > { %p832_p5 = por %p129_p2, %p128_p0  ;;  %p836_p6 = por %p135_p4, %p134_p3 }
   0xa   : > { %p590_p7 = scmp.ge.s32.totalorder %s763_s18, 1  ;;  %p175_p8 = scmp.lt.s32.totalorder %s763_s18, 3 }
   0xc   : > { %p176_p9 = pnand %p590_p7, %p175_p8 }
   0xd   : > { %p206_p10 = scmp.lt.s32.totalorder (!%p176_p9), %s815_s19, 1  ;;  %vm222_vm0 = vcmask (!%p176_p9), 130048   ;;  %v765_v17 = vmov (!%p176_p9), 0   ;;  %v395_v18 = vld [vmem:[%s914_s2] sm:$0xff] (!%p176_p9)  ;;  %vm415_vm1 = vcmask (!%p176_p9), 64512   ;;  %s203_s12 = sand.u32 (!%p176_p9), 1, %s755_s16  }
   0xe   : > { %179 = sbr.rel (%p176_p9) target bundleno = 644 (0x284), region = 36  ;;  %695 = vset.pattern.permute.xlu1 (!%p176_p9), %v765_v17  ;;  %696 = vset.pattern.permute.xlu0 (!%p176_p9), %v765_v17  ;;  %s591_s13 = sshll.u32 (!%p176_p9), %s203_s12, 4  ;;  %v600_v33 = vld [vmem:[%s915_s3] ss:$0 sm:$0xff] (!%p176_p9) }
   0xf   : > { %s205_s22 = scalar_lea.vmem (!%p176_p9), [#allocation2], %s591_s13 }
  0x10   : > { %s513_s23 = sshll.u32 (!%p176_p9), %s205_s22, 4  ;;  %s864_s23 = int_to_ptr.vmem [resolvable:$true] %s513_s23 }
  0x15   : > { %s207_s27 = scalar_select %p206_p10, %s815_s19, 1 }
  0x17   : > { %s608_s28 = sshll.u32 %s207_s27, 3  ;;  %s609_s6 = sshll.u32 %s207_s27, 4 }
  0x18   : > { %s210_s5 = scalar_lea.vmem %s912_s0, %s608_s28  ;;  %s215_s9 = scalar_lea.vmem %s913_s1, %s609_s6 }
  0x19   : > { %v612_v0 = vld [vmem:[%s210_s5] sm:$0xff]   ;;  %v221_v11 = vld [vmem:[%s215_s9 + $0x8] sm:$0xff]  ;;  %s610_s27 = sshll.u32 %s815_s19, 8  ;;  %s871_s5 = scalar_lea.sflag [#allocation3], %s203_s12 }
  0x1a   : > { %v613_v1 = vunpack.c.l.bf16 %v612_v0  ;;  %v614_v2 = vunpack.c.h.bf16 %v612_v0  ;;  %v220_v10 = vld [vmem:[%s215_s9] sm:$0xff]  ;;  %s869_s30 = scalar_lea.hbm %s916_s4, %s610_s27  ;;  %s701_s19 = scalar_lea.vmem %s864_s23, 256 }
  0x1b   : > { %p702_p11 = scmp.ne.s32.totalorder %s864_s23, %s701_s19  ;;  %s766_s6 = smov [#allocation2]  }
  0x1c   : > { %v223_v3 = vsel %vm222_vm0, %v613_v1, 0.0  ;;  %637 = vmatprep.mubr.msk.f32.mxu1 %vm222_vm0, %v613_v1  ;;  %630 = vmatprep.mubr.msk.f32.mxu0 %vm222_vm0, %v613_v1  ;;  %v226_v4 = vsel %vm222_vm0, %v614_v2, 0.0  ;;  %s705_s7 = sshll.u32 %s766_s6, 4  ;;  %s706_s7 = int_to_ptr.vmem [resolvable:$false] %s705_s7 }
  0x1d   : > { %224 = vadd.xlane.f32.xlu0 %v223_v3  ;;  %p703_p12 = pnand %p702_p11, %p832_p5  ;;  %s707_s8 = scalar_lea.vmem %s706_s7, 512 }
  0x1e   : > { %p708_p0 = scmp.lt.s32.totalorder %s864_s23, %s706_s7  ;;  %p709_p1 = scmp.lt.s32.totalorder %s707_s8, %s701_s19 }
  0x1f   : > { %p704_p13 = pneg %p703_p12 }
  0x20   : > { %p710_p2 = por %p709_p1, %p708_p0 }
  0x21   : > { %227 = vadd.xlane.f32.xlu0 %v226_v4 }
  0x22   : > { %p711_p3 = pnand %p710_p2, %p704_p13 }
  0xaa   : > { %v225_v5 = vpop.xlane.xlu0 %224 }
  0xab   : > { %v229_v6 = vadd.f32 1.0, %v225_v5 }
  0xad   : > { %697 = vrsqrt.f32 %v229_v6 }
  0xae   : > { %v228_v7 = vpop.xlane.xlu0 %227 }
  0xaf   : > { %v230_v8 = vadd.f32 1.0, %v228_v7 }
  0xb1   : > { %699 = vrsqrt.f32 %v230_v8 }
  0xb7   : > { %v698_v9 = vpop.eup %697 }
  0xb8   : > { %v233_v14 = vmul.f32 %v698_v9, %v220_v10 }
  0xbb   : > { %v700_v12 = vpop.eup %699 }
  0xbc   : > { %v649_v13 = vpack.c.bf16 %v700_v12, %v698_v9  ;;  %v234_v15 = vmul.f32 %v700_v12, %v221_v11 }
  0xbe   : > { %650 = vmatprep.subr.bf16.mxu1 %v649_v13  ;;  %v645_v16 = vpack.c.bf16 %v234_v15, %v233_v14 }
  0xbf   : > { %652 = vmatpush3.bf16.msra.mxu1 %v649_v13 }
  0xc0   : > { %646 = vmatprep.subr.bf16.mxu0 %v645_v16 }
  0xc1   : > { %648 = vmatpush3.bf16.msra.mxu0 %v645_v16 }
  0xc2   : > { %638 = vmatmul.mubr.msk.f32.vlgmr.msra.gmra.mrb[0].mxu1 %vm222_vm0, %v614_v2  ;;  %640 = vmatprep.subr.mxu0 %v395_v18 }
  0xc4   : > { %631 = vmatmul.mubr.msk.f32.vlgmr.msra.gmra.mrb[0].mxu0 %vm222_vm0, %v614_v2 }
  0xc5   : > { %641 = vmatpush3.msra.mxu0 %v395_v18 }
 0x195   : > { %v639_v19 = vpop.f32.mrb[0].mxu1 }
 0x196   : > { %v384_v20 = vpop.f32.mrb[1].mxu1  ;;  %v390_v25 = vadd.f32 %v700_v12, %v639_v19 }
 0x197   : > { %v385_v21 = vadd.f32 %v698_v9, %v384_v20  ;;  %v632_v22 = vpop.f32.mrb[0].mxu0 }
 0x198   : > { %v313_v23 = vadd.f32 %v632_v22, %v234_v15  ;;  %v307_v24 = vpop.f32.mrb[1].mxu0  ;;  %v394_v30 = vmul.f32 %v700_v12, %v390_v25 }
 0x199   : > { %v308_v26 = vadd.f32 %v307_v24, %v233_v14  ;;  %v393_v27 = vmul.f32 %v698_v9, %v385_v21 }
 0x19a   : > { %v317_v29 = vmul.f32 %v700_v12, %v313_v23 }
 0x19b   : > { %v316_v28 = vmul.f32 %v698_v9, %v308_v26  ;;  %399 = vperm.xlu1 %695, %v393_v27  }
 0x19d   : > { %642 = vmatprep.mubr.msk.f32.mxu0 %vm415_vm1, %v316_v28 }
 0x19e   : > { %643 = vmatmul.mubr.msk.f32.vlgmr.msra.gmra.mrb[2].mxu0 %vm415_vm1, %v317_v29 }
 0x19f   : > { %404 = vperm.xlu1 %695, %v394_v30  }
 0x21a   : > { %v400_v31 = vpop.permute.xlu1 %399 }
 0x21b   : > { %v413_v35 = vmul.f32 %v600_v33, %v400_v31 }
 0x21e   : > { %v405_v32 = vpop.permute.xlu1 %404 }
 0x21f   : > { %v414_v34 = vmul.f32 %v600_v33, %v405_v32 }
 0x271   : > { %v644_v36 = vpop.f32.mrb[2].mxu0 }
 0x272   : > { %v494_v37 = vadd.f32 %v644_v36, %v414_v34  ;;  %v488_v38 = vpop.f32.mrb[3].mxu0 }
 0x273   : > { %v489_v39 = vadd.f32 %v488_v38, %v413_v35 }
 0x274   : > { %498 = vst [vmem:[%s205_s22 + $0x8] sm:$0xff] %v494_v37 }
 0x275   : > { %497 = vst [vmem:[%s205_s22] sm:$0xff] %v489_v39 }
 0x276   : > { %714 = shalt.err (!%p711_p3)
}
 0x277   : > { %s715_s9 = scalar_lea.hbm %s869_s30, 256  ;;  %s719_s12 = scalar_lea.hbm %s916_s4, 512 }
 0x278   : > { %p716_p4 = scmp.ne.s32.totalorder %s869_s30, %s715_s9  ;;  %p720_p9 = scmp.lt.u32.totalorder %s869_s30, %s916_s4 }
 0x279   : > { %p721_p10 = scmp.lt.u32.totalorder %s719_s12, %s715_s9  ;;  %p723_p12 = scmp.lt.u32.totalorder %s715_s9, %s869_s30 }
 0x27a   : > { %p717_p7 = pnand %p716_p4, %p832_p5 }
 0x27b   : > { %p722_p11 = por %p721_p10, %p720_p9 }
 0x27c   : > { %p718_p8 = pneg %p717_p7 }
 0x27d   : > { %p724_p13 = por %p723_p12, %p722_p11 }
 0x27f   : > { %p725_p0 = pnand %p724_p13, %p718_p8 }
 0x281   : > { %728 = shalt.err (!%p725_p0)
}
 0x282   : > { %s767_s20 = smov 128   ;;  %s768_s22 = smov 8  }
 0x283   : > { %653 = dma.vmem_to_hbm [thread:$0]  (%p832_p5), %s864_s23, 256, %s869_s30, %s871_s5, %s767_s20, %s767_s20, %s768_s22  }
 0x284 PF: > { %p659_p1 = scmp.ge.s32.totalorder %s763_s18, 2  ;;  %s528_s27 = sand.u32 1, %s751_s15  }
 0x285   : > { %s529_s28 = scalar_lea.sflag [#allocation3], %s528_s27 }
 0x286   : > { %p656_p2 = pnand %p659_p1, %p836_p6 }
 0x288   : > { %746 = dma.done.wait (!%p656_p2), %s529_s28, 256  }
 0x289   : > { %748 = vsyncadd (!%p656_p2), %s529_s28, 4294967040  ;;  %p14_p3 = scmp.ge.s32.totalorder %s819_s21, 4   ;;  %s919_s15 = smov %s755_s16 }
 0x28a   : > { %s920_s16 = smov %s759_s17  ;;  %s921_s17 = smov %s830_s24 }
 0x28b   : > { %s922_s18 = smov %s819_s21  ;;  %16 = sbr.rel (!%p14_p3) target bundleno = 3 (0x3), region = 74 }
 0x292   :  { %534 = vsyncpa [#allocation3], 1 }
 0x293   :  { %536 = vsyncpa [#allocation3 + $0x1], 1 }

</bundles_post_ra>
